<compile_context>
chip_gen: v6e
topology: v6e:2x2x1
jax: 0.10.0
libtpu: 0.0.40
codegen_flags: <defaults>
</compile_context>

<pallas_src>
import math

import jax
import jax.numpy as jnp
from jax.experimental import pallas as pl
from jax.experimental.pallas import tpu as pltpu

# ---------------- model hyperparameters (small, consistent with the module) -------
D_MODEL = 32
NHEAD = 4
HEAD_DIM = D_MODEL // NHEAD
DIM_FF = 64
NUM_LAYERS = 2          # module default is 6; kept small for the demo
LN_EPS = 1e-5
BATCH = 2
SEQ = 8                 # hw

BIAS_COLS = 3 * D_MODEL  # width of the packed bias/LayerNorm slab (= 96, >= DIM_FF)
assert BIAS_COLS >= DIM_FF


def _layer_norm_fused(x, gamma, beta):
    # One-pass LayerNorm: Var = E[x^2] - E[x]^2 (half the cross-lane reductions).
    mean = jnp.mean(x, axis=-1, keepdims=True)
    mean_sq = jnp.mean(x * x, axis=-1, keepdims=True)
    var = mean_sq - mean * mean
    return (x - mean) * jax.lax.rsqrt(var + LN_EPS) * gamma + beta


# ---------------- Pallas kernel: one (batch-element, layer) grid step -------------
def _make_encoder_kernel(compute_dtype):
    """Kernel factory; `compute_dtype` is the MXU operand dtype (bf16 or f32)."""
    cdt = compute_dtype

    def kernel(x_ref, wqkv_ref, wo_ref, w1_ref, w2_ref, bias_ref, o_ref):
        layer = pl.program_id(1)

        # Seed the resident activation: the output block index depends only on the
        # batch axis, so it stays in VMEM across the whole layer axis and is only
        # written back to HBM when the batch index advances.
        @pl.when(layer == 0)
        def _():
            o_ref[...] = x_ref[...]

        x = o_ref[...]                       # (S, D) f32 resident activation
        b = bias_ref[...]                    # (8, BIAS_COLS) f32 bias/LN slab
        bqkv = b[0:1, :3 * D_MODEL]          # (1, 3D)
        b1   = b[1:2, :DIM_FF]               # (1, F)
        bo   = b[2:3, :D_MODEL]              # (1, D)
        b2   = b[3:4, :D_MODEL]
        g1   = b[4:5, :D_MODEL]
        be1  = b[5:6, :D_MODEL]
        g2   = b[6:7, :D_MODEL]
        be2  = b[7:8, :D_MODEL]

        # --- packed QKV projection (1/sqrt(dh) pre-folded into the Q columns) -----
        qkv = jnp.dot(x.astype(cdt), wqkv_ref[...],
                      preferred_element_type=jnp.float32) + bqkv        # (S, 3D) f32

        # --- multi-head self-attention --------------------------------------------
        # Each head's context is folded directly into the out-projection:
        #   attn = sum_h ctx_h @ wo[h*dh:(h+1)*dh, :]  ==  concat(heads) @ wo
        # so no lane concatenation / layout reshuffle is needed.
        wo = wo_ref[...]                                                 # (D, D)
        attn = jnp.zeros((SEQ, D_MODEL), jnp.float32)
        for h in range(NHEAD):               # static unroll; NHEAD=4, head_dim=8
            lo = h * HEAD_DIM
            hi = lo + HEAD_DIM
            q_h = qkv[:, lo:hi].astype(cdt)                              # (S, dh)
            k_h = qkv[:, D_MODEL + lo:D_MODEL + hi].astype(cdt)
            v_h = qkv[:, 2 * D_MODEL + lo:2 * D_MODEL + hi].astype(cdt)
            s = jnp.einsum('qd,kd->qk', q_h, k_h,
                           preferred_element_type=jnp.float32)           # (S, S) f32
            s = s - jnp.max(s, axis=-1, keepdims=True)
            p = jnp.exp(s)
            p = p * pl.reciprocal(jnp.sum(p, axis=-1, keepdims=True), approx=True)
            ctx_h = jnp.dot(p.astype(cdt), v_h,
                            preferred_element_type=jnp.float32)          # (S, dh) f32
            attn = attn + jnp.dot(ctx_h.astype(cdt), wo[lo:hi, :],
                                  preferred_element_type=jnp.float32)
        attn = attn + bo

        # --- residual + norm1 (dropout1 == identity at inference) -----------------
        y = _layer_norm_fused(x + attn, g1, be1)

        # --- feed-forward: linear1 -> relu -> linear2 ------------------------------
        h1 = jnp.maximum(
            jnp.dot(y.astype(cdt), w1_ref[...],
                    preferred_element_type=jnp.float32) + b1, 0.0)
        h2 = jnp.dot(h1.astype(cdt), w2_ref[...],
                     preferred_element_type=jnp.float32) + b2

        # --- residual + norm2: becomes the next layer's input ---------------------
        o_ref[...] = _layer_norm_fused(y + h2, g2, be2)

    return kernel


def transformer_pallas(x, wqkv, wo, w1, w2, bias):
    """x: (B, S, D) f32. Weight slabs carry a leading layer axis (streamed)."""
    B, S, D = x.shape
    L = wqkv.shape[0]
    kernel = _make_encoder_kernel(wqkv.dtype)

    return pl.pallas_call(
        kernel,
        out_shape=jax.ShapeDtypeStruct((B, S, D), jnp.float32),
        grid_spec=pltpu.PrefetchScalarGridSpec(
            num_scalar_prefetch=0,
            grid=(B, L),                      # (parallel batch, streamed layers)
            in_specs=[
                pl.BlockSpec((None, S, D), lambda b, l: (b, 0, 0)),          # x
                pl.BlockSpec((None, D, 3 * D), lambda b, l: (l, 0, 0)),      # wqkv
                pl.BlockSpec((None, D, D), lambda b, l: (l, 0, 0)),          # wo
                pl.BlockSpec((None, D, DIM_FF), lambda b, l: (l, 0, 0)),     # w1
                pl.BlockSpec((None, DIM_FF, D), lambda b, l: (l, 0, 0)),     # w2
                pl.BlockSpec((None, 8, BIAS_COLS), lambda b, l: (l, 0, 0)),  # bias/LN
            ],
            out_specs=pl.BlockSpec((None, S, D), lambda b, l: (b, 0, 0)),
        ),
        compiler_params=pltpu.CompilerParams(
            dimension_semantics=("parallel", "arbitrary")),
    )(x, wqkv, wo, w1, w2, bias)


# ---------------- parameter initialization (deterministic, PyTorch-like shapes) ---
def _xavier(key, shape):
    fan_out, fan_in = shape
    limit = math.sqrt(6.0 / (fan_in + fan_out))
    return jax.random.uniform(key, shape, jnp.float32, -limit, limit)


def init_layer_params(key):
    ks = jax.random.split(key, 6)
    return dict(
        in_proj_w=_xavier(ks[0], (3 * D_MODEL, D_MODEL)),      # MHA packed qkv weight
        in_proj_b=jnp.zeros((3 * D_MODEL,), jnp.float32),
        out_w=_xavier(ks[1], (D_MODEL, D_MODEL)),               # MHA out_proj
        out_b=jnp.zeros((D_MODEL,), jnp.float32),
        w1=_xavier(ks[2], (DIM_FF, D_MODEL)),                   # linear1
        b1=0.02 * jax.random.normal(ks[3], (DIM_FF,), jnp.float32),
        w2=_xavier(ks[4], (D_MODEL, DIM_FF)),                   # linear2
        b2=0.02 * jax.random.normal(ks[5], (D_MODEL,), jnp.float32),
        g1=jnp.ones((D_MODEL,), jnp.float32),                   # LayerNorm1
        be1=jnp.zeros((D_MODEL,), jnp.float32),
        g2=jnp.ones((D_MODEL,), jnp.float32),                   # LayerNorm2
        be2=jnp.zeros((D_MODEL,), jnp.float32),
    )


def _pad_to(v, width):
    return jnp.pad(v, (0, width - v.shape[0]))


def stack_kernel_params(layer_params, compute_dtype):
    """Pack PyTorch-layout params into layer-stacked, pre-transposed kernel slabs.

    Weight slabs are cast to `compute_dtype` (bf16 on the production path); the
    bias / LayerNorm slab stays f32 (it feeds VPU adds, not the MXU).
    """
    scale = 1.0 / math.sqrt(HEAD_DIM)
    wqkv_l, wo_l, w1_l, w2_l, bias_l = [], [], [], [], []
    for p in layer_params:
        wqkv = p["in_proj_w"].T                                 # (D, 3D), cols [q|k|v]
        wqkv = wqkv.at[:, :D_MODEL].multiply(scale)             # fold 1/sqrt(dh) into Q
        bqkv = p["in_proj_b"].at[:D_MODEL].multiply(scale)
        bias_rows = jnp.stack([
            _pad_to(bqkv, BIAS_COLS),                           # row 0: qkv bias
            _pad_to(p["b1"], BIAS_COLS),                        # row 1: linear1 bias
            _pad_to(p["out_b"], BIAS_COLS),                     # row 2: out_proj bias
            _pad_to(p["b2"], BIAS_COLS),                        # row 3: linear2 bias
            _pad_to(p["g1"], BIAS_COLS),                        # row 4: LN1 gamma
            _pad_to(p["be1"], BIAS_COLS),                       # row 5: LN1 beta
            _pad_to(p["g2"], BIAS_COLS),                        # row 6: LN2 gamma
            _pad_to(p["be2"], BIAS_COLS),                       # row 7: LN2 beta
        ])
        wqkv_l.append(wqkv)
        wo_l.append(p["out_w"].T)                               # (D, D)
        w1_l.append(p["w1"].T)                                  # (D, F)
        w2_l.append(p["w2"].T)                                  # (F, D)
        bias_l.append(bias_rows)                                # (8, BIAS_COLS)

    def cast_stack(lst):
        return jnp.stack(lst).astype(compute_dtype)

    return (cast_stack(wqkv_l), cast_stack(wo_l), cast_stack(w1_l),
            cast_stack(w2_l), jnp.stack(bias_l))                # bias slab stays f32


# ---------------- full Transformer forward (Pallas) -------------------------------
def transformer_forward(src, pos_embed, layer_params, compute_dtype=jnp.bfloat16):
    # src: (bs, hw, d). pos_embed is unused by forward_post (matches reference code).
    del pos_embed
    x = src.astype(jnp.float32)
    slabs = stack_kernel_params(layer_params, compute_dtype)
    out = transformer_pallas(x, *slabs)                 # (bs, hw, d)
    # PyTorch returns memory in (hw, bs, d) layout (seq-first).
    return out.transpose(1, 0, 2)


# ---------------- pure-JAX reference (same math, standard formulation) ------------
def _layer_norm_ref(x, gamma, beta):
    mean = jnp.mean(x, axis=-1, keepdims=True)
    var = jnp.mean((x - mean) ** 2, axis=-1, keepdims=True)
    return (x - mean) * jax.lax.rsqrt(var + LN_EPS) * gamma + beta


def reference_forward(src, pos_embed, layer_params):
    del pos_embed
    x = src.astype(jnp.float32)
    bs, S, D = x.shape
    for p in layer_params:
        qkv = x @ p["in_proj_w"].T + p["in_proj_b"]
        q, k, v = jnp.split(qkv, 3, axis=-1)

        def heads(t):
            return t.reshape(bs, S, NHEAD, HEAD_DIM).transpose(0, 2, 1, 3)

        qh, kh, vh = heads(q), heads(k), heads(v)
        s = jnp.einsum("bhqd,bhkd->bhqk", qh, kh) / math.sqrt(HEAD_DIM)
        pr = jax.nn.softmax(s, axis=-1)
        ctx = jnp.einsum("bhqk,bhkd->bhqd", pr, vh).transpose(0, 2, 1, 3).reshape(bs, S, D)
        attn = ctx @ p["out_w"].T + p["out_b"]
        y = _layer_norm_ref(x + attn, p["g1"], p["be1"])
        h1 = jax.nn.relu(y @ p["w1"].T + p["b1"])
        h2 = h1 @ p["w2"].T + p["b2"]
        x = _layer_norm_ref(y + h2, p["g2"], p["be2"])
    return jnp.transpose(x, (1, 0, 2))


if __name__ == "__main__":
    key = jax.random.PRNGKey(0)
    k_src, k_pos, k_par = jax.random.split(key, 3)

    src = jax.random.normal(k_src, (BATCH, SEQ, D_MODEL), jnp.float32)
    pos_embed = jax.random.normal(k_pos, (BATCH, SEQ, D_MODEL), jnp.float32)

    layer_params = [init_layer_params(jax.random.fold_in(k_par, i))
                    for i in range(NUM_LAYERS)]

    ref = jax.block_until_ready(reference_forward(src, pos_embed, layer_params))

    # Correctness check: f32 MXU operands -> only deliberate deviation from the
    # exact reference is the EUP approximate reciprocal in the softmax denominator.
    out_f32 = jax.block_until_ready(
        transformer_forward(src, pos_embed, layer_params, compute_dtype=jnp.float32))
    assert out_f32.shape == (SEQ, BATCH, D_MODEL), out_f32.shape
    err_f32 = float(jnp.max(jnp.abs(out_f32 - ref)))
    assert err_f32 < 5e-3, err_f32

    # Production path: bf16 MXU operands (f32 accumulation / softmax / LayerNorm).
    out_bf16 = jax.block_until_ready(
        transformer_forward(src, pos_embed, layer_params, compute_dtype=jnp.bfloat16))
    assert out_bf16.shape == (SEQ, BATCH, D_MODEL), out_bf16.shape
    err_bf16 = float(jnp.max(jnp.abs(out_bf16 - ref)))
    assert err_bf16 < 0.25, err_bf16

    print("KERNEL_OK")
</pallas_src>

<mosaic_0001>
module attributes {stable_mosaic.version = 11 : i64} {
  func.func @kernel(%arg0: i32, %arg1: i32, %arg2: memref<1x8x32xf32, #tpu.memory_space<vmem>>, %arg3: memref<1x32x96xf32, #tpu.memory_space<vmem>>, %arg4: memref<1x32x32xf32, #tpu.memory_space<vmem>>, %arg5: memref<1x32x64xf32, #tpu.memory_space<vmem>>, %arg6: memref<1x64x32xf32, #tpu.memory_space<vmem>>, %arg7: memref<1x8x96xf32, #tpu.memory_space<vmem>>, %arg8: memref<1x8x32xf32, #tpu.memory_space<vmem>>) attributes {dimension_semantics = [#tpu.dimension_semantics<parallel>, #tpu.dimension_semantics<arbitrary>], iteration_bounds = array<i64: 2, 2>, scalar_prefetch = 0 : i64, scratch_operands = 0 : i64, tpu.core_type = #tpu.core_type<tc>, window_params = [{transform_indices = @transform_0, window_bounds = array<i64: 1, 8, 32>}, {transform_indices = @transform_1, window_bounds = array<i64: 1, 32, 96>}, {transform_indices = @transform_2, window_bounds = array<i64: 1, 32, 32>}, {transform_indices = @transform_3, window_bounds = array<i64: 1, 32, 64>}, {transform_indices = @transform_4, window_bounds = array<i64: 1, 64, 32>}, {transform_indices = @transform_5, window_bounds = array<i64: 1, 8, 96>}, {transform_indices = @transform_6, window_bounds = array<i64: 1, 8, 32>}]} {
    %c0_i32 = arith.constant 0 : i32
    %0 = arith.cmpi eq, %arg1, %c0_i32 : i32
    %1 = arith.extui %0 : i1 to i32
    %c0_i32_0 = arith.constant 0 : i32
    %2 = arith.cmpi ne, %1, %c0_i32_0 : i32
    scf.if %2 {
      %c0_55 = arith.constant 0 : index
      %c0_56 = arith.constant 0 : index
      %c0_57 = arith.constant 0 : index
      %158 = vector.load %arg2[%c0_55, %c0_56, %c0_57] : memref<1x8x32xf32, #tpu.memory_space<vmem>>, vector<1x8x32xf32>
      %159 = vector.shape_cast %158 : vector<1x8x32xf32> to vector<8x32xf32>
      %c0_58 = arith.constant 0 : index
      %c0_59 = arith.constant 0 : index
      %c0_60 = arith.constant 0 : index
      %160 = vector.load %arg8[%c0_58, %c0_59, %c0_60] : memref<1x8x32xf32, #tpu.memory_space<vmem>>, vector<1x8x32xf32>
      %161 = vector.shape_cast %160 : vector<1x8x32xf32> to vector<8x32xf32>
      %162 = vector.shape_cast %159 : vector<8x32xf32> to vector<1x8x32xf32>
      tpu.vector_store %arg8[%c0_58, %c0_59, %c0_60], %162 {strides = array<i32>} : memref<1x8x32xf32, #tpu.memory_space<vmem>>, vector<1x8x32xf32>,
    } else {
    }
    %c0 = arith.constant 0 : index
    %c0_1 = arith.constant 0 : index
    %c0_2 = arith.constant 0 : index
    %3 = vector.load %arg8[%c0, %c0_1, %c0_2] : memref<1x8x32xf32, #tpu.memory_space<vmem>>, vector<1x8x32xf32>
    %4 = vector.shape_cast %3 : vector<1x8x32xf32> to vector<8x32xf32>
    %c0_3 = arith.constant 0 : index
    %c0_4 = arith.constant 0 : index
    %c0_5 = arith.constant 0 : index
    %5 = vector.load %arg7[%c0_3, %c0_4, %c0_5] : memref<1x8x96xf32, #tpu.memory_space<vmem>>, vector<1x8x96xf32>
    %6 = vector.shape_cast %5 : vector<1x8x96xf32> to vector<8x96xf32>
    %7 = vector.extract_strided_slice %6 {offsets = [0, 0], sizes = [1, 96], strides = [1, 1]} : vector<8x96xf32> to vector<1x96xf32>
    %8 = vector.extract_strided_slice %6 {offsets = [1, 0], sizes = [1, 64], strides = [1, 1]} : vector<8x96xf32> to vector<1x64xf32>
    %9 = vector.extract_strided_slice %6 {offsets = [2, 0], sizes = [1, 32], strides = [1, 1]} : vector<8x96xf32> to vector<1x32xf32>
    %10 = vector.extract_strided_slice %6 {offsets = [3, 0], sizes = [1, 32], strides = [1, 1]} : vector<8x96xf32> to vector<1x32xf32>
    %11 = vector.extract_strided_slice %6 {offsets = [4, 0], sizes = [1, 32], strides = [1, 1]} : vector<8x96xf32> to vector<1x32xf32>
    %12 = vector.extract_strided_slice %6 {offsets = [5, 0], sizes = [1, 32], strides = [1, 1]} : vector<8x96xf32> to vector<1x32xf32>
    %13 = vector.extract_strided_slice %6 {offsets = [6, 0], sizes = [1, 32], strides = [1, 1]} : vector<8x96xf32> to vector<1x32xf32>
    %14 = vector.extract_strided_slice %6 {offsets = [7, 0], sizes = [1, 32], strides = [1, 1]} : vector<8x96xf32> to vector<1x32xf32>
    %c0_6 = arith.constant 0 : index
    %c0_7 = arith.constant 0 : index
    %c0_8 = arith.constant 0 : index
    %15 = vector.load %arg3[%c0_6, %c0_7, %c0_8] : memref<1x32x96xf32, #tpu.memory_space<vmem>>, vector<1x32x96xf32>
    %16 = vector.shape_cast %15 : vector<1x32x96xf32> to vector<32x96xf32>
    %cst = arith.constant dense<0.000000e+00> : vector<8x96xf32>
    %17 = tpu.matmul %4, %16, %cst {dimension_numbers = #tpu.dot_dimension_numbers<[1], [0], [0], [1], [0, 0, 1, 1], [], []>} : vector<8x32xf32>, vector<32x96xf32>, vector<8x96xf32> -> vector<8x96xf32>
    %18 = vector.broadcast %7 : vector<1x96xf32> to vector<8x96xf32>
    %19 = arith.addf %17, %18 : vector<8x96xf32>
    %c0_9 = arith.constant 0 : index
    %c0_10 = arith.constant 0 : index
    %c0_11 = arith.constant 0 : index
    %20 = vector.load %arg4[%c0_9, %c0_10, %c0_11] : memref<1x32x32xf32, #tpu.memory_space<vmem>>, vector<1x32x32xf32>
    %21 = vector.shape_cast %20 : vector<1x32x32xf32> to vector<32x32xf32>
    %cst_12 = arith.constant 0.000000e+00 : f32
    %22 = vector.broadcast %cst_12 : f32 to vector<8x32xf32>
    %23 = vector.extract_strided_slice %19 {offsets = [0, 0], sizes = [8, 8], strides = [1, 1]} : vector<8x96xf32> to vector<8x8xf32>
    %24 = vector.extract_strided_slice %19 {offsets = [0, 32], sizes = [8, 8], strides = [1, 1]} : vector<8x96xf32> to vector<8x8xf32>
    %25 = vector.extract_strided_slice %19 {offsets = [0, 64], sizes = [8, 8], strides = [1, 1]} : vector<8x96xf32> to vector<8x8xf32>
    "tpu.trace_start"() <{level = 10 : i32, message = "qd,kd->qk"}> : () -> ()
    %cst_13 = arith.constant dense<0.000000e+00> : vector<8x8xf32>
    %26 = tpu.matmul %23, %24, %cst_13 {dimension_numbers = #tpu.dot_dimension_numbers<[1], [1], [0], [0], [0, 0, 1, 0], [], []>} : vector<8x8xf32>, vector<8x8xf32>, vector<8x8xf32> -> vector<8x8xf32>
    "tpu.trace_stop"() : () -> ()
    %cst_14 = arith.constant dense<0xFF800000> : vector<8xf32>
    %27 = vector.multi_reduction <maximumf>, %26, %cst_14 [1] : vector<8x8xf32> to vector<8xf32>
    %28 = vector.shape_cast %27 : vector<8xf32> to vector<8x1xf32>
    %29 = vector.broadcast %28 : vector<8x1xf32> to vector<8x8xf32>
    %30 = arith.subf %26, %29 : vector<8x8xf32>
    %31 = math.exp %30 : vector<8x8xf32>
    %cst_15 = arith.constant dense<0.000000e+00> : vector<8xf32>
    %32 = vector.multi_reduction <add>, %31, %cst_15 [1] : vector<8x8xf32> to vector<8xf32>
    %33 = vector.shape_cast %32 : vector<8xf32> to vector<8x1xf32>
    %34 = tpu.reciprocal %33 {approx = true} : vector<8x1xf32> -> vector<8x1xf32>
    %35 = vector.broadcast %34 : vector<8x1xf32> to vector<8x8xf32>
    %36 = arith.mulf %31, %35 : vector<8x8xf32>
    %cst_16 = arith.constant dense<0.000000e+00> : vector<8x8xf32>
    %37 = tpu.matmul %36, %25, %cst_16 {dimension_numbers = #tpu.dot_dimension_numbers<[1], [0], [0], [1], [0, 0, 1, 1], [], []>} : vector<8x8xf32>, vector<8x8xf32>, vector<8x8xf32> -> vector<8x8xf32>
    %38 = vector.extract_strided_slice %21 {offsets = [0, 0], sizes = [8, 32], strides = [1, 1]} : vector<32x32xf32> to vector<8x32xf32>
    %cst_17 = arith.constant dense<0.000000e+00> : vector<8x32xf32>
    %39 = tpu.matmul %37, %38, %cst_17 {dimension_numbers = #tpu.dot_dimension_numbers<[1], [0], [0], [1], [0, 0, 1, 1], [], []>} : vector<8x8xf32>, vector<8x32xf32>, vector<8x32xf32> -> vector<8x32xf32>
    %40 = arith.addf %22, %39 : vector<8x32xf32>
    %41 = vector.extract_strided_slice %19 {offsets = [0, 8], sizes = [8, 8], strides = [1, 1]} : vector<8x96xf32> to vector<8x8xf32>
    %42 = vector.extract_strided_slice %19 {offsets = [0, 40], sizes = [8, 8], strides = [1, 1]} : vector<8x96xf32> to vector<8x8xf32>
    %43 = vector.extract_strided_slice %19 {offsets = [0, 72], sizes = [8, 8], strides = [1, 1]} : vector<8x96xf32> to vector<8x8xf32>
    "tpu.trace_start"() <{level = 10 : i32, message = "qd,kd->qk"}> : () -> ()
    %cst_18 = arith.constant dense<0.000000e+00> : vector<8x8xf32>
    %44 = tpu.matmul %41, %42, %cst_18 {dimension_numbers = #tpu.dot_dimension_numbers<[1], [1], [0], [0], [0, 0, 1, 0], [], []>} : vector<8x8xf32>, vector<8x8xf32>, vector<8x8xf32> -> vector<8x8xf32>
    "tpu.trace_stop"() : () -> ()
    %cst_19 = arith.constant dense<0xFF800000> : vector<8xf32>
    %45 = vector.multi_reduction <maximumf>, %44, %cst_19 [1] : vector<8x8xf32> to vector<8xf32>
    %46 = vector.shape_cast %45 : vector<8xf32> to vector<8x1xf32>
    %47 = vector.broadcast %46 : vector<8x1xf32> to vector<8x8xf32>
    %48 = arith.subf %44, %47 : vector<8x8xf32>
    %49 = math.exp %48 : vector<8x8xf32>
    %cst_20 = arith.constant dense<0.000000e+00> : vector<8xf32>
    %50 = vector.multi_reduction <add>, %49, %cst_20 [1] : vector<8x8xf32> to vector<8xf32>
    %51 = vector.shape_cast %50 : vector<8xf32> to vector<8x1xf32>
    %52 = tpu.reciprocal %51 {approx = true} : vector<8x1xf32> -> vector<8x1xf32>
    %53 = vector.broadcast %52 : vector<8x1xf32> to vector<8x8xf32>
    %54 = arith.mulf %49, %53 : vector<8x8xf32>
    %cst_21 = arith.constant dense<0.000000e+00> : vector<8x8xf32>
    %55 = tpu.matmul %54, %43, %cst_21 {dimension_numbers = #tpu.dot_dimension_numbers<[1], [0], [0], [1], [0, 0, 1, 1], [], []>} : vector<8x8xf32>, vector<8x8xf32>, vector<8x8xf32> -> vector<8x8xf32>
    %56 = vector.extract_strided_slice %21 {offsets = [8, 0], sizes = [8, 32], strides = [1, 1]} : vector<32x32xf32> to vector<8x32xf32>
    %cst_22 = arith.constant dense<0.000000e+00> : vector<8x32xf32>
    %57 = tpu.matmul %55, %56, %cst_22 {dimension_numbers = #tpu.dot_dimension_numbers<[1], [0], [0], [1], [0, 0, 1, 1], [], []>} : vector<8x8xf32>, vector<8x32xf32>, vector<8x32xf32> -> vector<8x32xf32>
    %58 = arith.addf %40, %57 : vector<8x32xf32>
    %59 = vector.extract_strided_slice %19 {offsets = [0, 16], sizes = [8, 8], strides = [1, 1]} : vector<8x96xf32> to vector<8x8xf32>
    %60 = vector.extract_strided_slice %19 {offsets = [0, 48], sizes = [8, 8], strides = [1, 1]} : vector<8x96xf32> to vector<8x8xf32>
    %61 = vector.extract_strided_slice %19 {offsets = [0, 80], sizes = [8, 8], strides = [1, 1]} : vector<8x96xf32> to vector<8x8xf32>
    "tpu.trace_start"() <{level = 10 : i32, message = "qd,kd->qk"}> : () -> ()
    %cst_23 = arith.constant dense<0.000000e+00> : vector<8x8xf32>
    %62 = tpu.matmul %59, %60, %cst_23 {dimension_numbers = #tpu.dot_dimension_numbers<[1], [1], [0], [0], [0, 0, 1, 0], [], []>} : vector<8x8xf32>, vector<8x8xf32>, vector<8x8xf32> -> vector<8x8xf32>
    "tpu.trace_stop"() : () -> ()
    %cst_24 = arith.constant dense<0xFF800000> : vector<8xf32>
    %63 = vector.multi_reduction <maximumf>, %62, %cst_24 [1] : vector<8x8xf32> to vector<8xf32>
    %64 = vector.shape_cast %63 : vector<8xf32> to vector<8x1xf32>
    %65 = vector.broadcast %64 : vector<8x1xf32> to vector<8x8xf32>
    %66 = arith.subf %62, %65 : vector<8x8xf32>
    %67 = math.exp %66 : vector<8x8xf32>
    %cst_25 = arith.constant dense<0.000000e+00> : vector<8xf32>
    %68 = vector.multi_reduction <add>, %67, %cst_25 [1] : vector<8x8xf32> to vector<8xf32>
    %69 = vector.shape_cast %68 : vector<8xf32> to vector<8x1xf32>
    %70 = tpu.reciprocal %69 {approx = true} : vector<8x1xf32> -> vector<8x1xf32>
    %71 = vector.broadcast %70 : vector<8x1xf32> to vector<8x8xf32>
    %72 = arith.mulf %67, %71 : vector<8x8xf32>
    %cst_26 = arith.constant dense<0.000000e+00> : vector<8x8xf32>
    %73 = tpu.matmul %72, %61, %cst_26 {dimension_numbers = #tpu.dot_dimension_numbers<[1], [0], [0], [1], [0, 0, 1, 1], [], []>} : vector<8x8xf32>, vector<8x8xf32>, vector<8x8xf32> -> vector<8x8xf32>
    %74 = vector.extract_strided_slice %21 {offsets = [16, 0], sizes = [8, 32], strides = [1, 1]} : vector<32x32xf32> to vector<8x32xf32>
    %cst_27 = arith.constant dense<0.000000e+00> : vector<8x32xf32>
    %75 = tpu.matmul %73, %74, %cst_27 {dimension_numbers = #tpu.dot_dimension_numbers<[1], [0], [0], [1], [0, 0, 1, 1], [], []>} : vector<8x8xf32>, vector<8x32xf32>, vector<8x32xf32> -> vector<8x32xf32>
    %76 = arith.addf %58, %75 : vector<8x32xf32>
    %77 = vector.extract_strided_slice %19 {offsets = [0, 24], sizes = [8, 8], strides = [1, 1]} : vector<8x96xf32> to vector<8x8xf32>
    %78 = vector.extract_strided_slice %19 {offsets = [0, 56], sizes = [8, 8], strides = [1, 1]} : vector<8x96xf32> to vector<8x8xf32>
    %79 = vector.extract_strided_slice %19 {offsets = [0, 88], sizes = [8, 8], strides = [1, 1]} : vector<8x96xf32> to vector<8x8xf32>
    "tpu.trace_start"() <{level = 10 : i32, message = "qd,kd->qk"}> : () -> ()
    %cst_28 = arith.constant dense<0.000000e+00> : vector<8x8xf32>
    %80 = tpu.matmul %77, %78, %cst_28 {dimension_numbers = #tpu.dot_dimension_numbers<[1], [1], [0], [0], [0, 0, 1, 0], [], []>} : vector<8x8xf32>, vector<8x8xf32>, vector<8x8xf32> -> vector<8x8xf32>
    "tpu.trace_stop"() : () -> ()
    %cst_29 = arith.constant dense<0xFF800000> : vector<8xf32>
    %81 = vector.multi_reduction <maximumf>, %80, %cst_29 [1] : vector<8x8xf32> to vector<8xf32>
    %82 = vector.shape_cast %81 : vector<8xf32> to vector<8x1xf32>
    %83 = vector.broadcast %82 : vector<8x1xf32> to vector<8x8xf32>
    %84 = arith.subf %80, %83 : vector<8x8xf32>
    %85 = math.exp %84 : vector<8x8xf32>
    %cst_30 = arith.constant dense<0.000000e+00> : vector<8xf32>
    %86 = vector.multi_reduction <add>, %85, %cst_30 [1] : vector<8x8xf32> to vector<8xf32>
    %87 = vector.shape_cast %86 : vector<8xf32> to vector<8x1xf32>
    %88 = tpu.reciprocal %87 {approx = true} : vector<8x1xf32> -> vector<8x1xf32>
    %89 = vector.broadcast %88 : vector<8x1xf32> to vector<8x8xf32>
    %90 = arith.mulf %85, %89 : vector<8x8xf32>
    %cst_31 = arith.constant dense<0.000000e+00> : vector<8x8xf32>
    %91 = tpu.matmul %90, %79, %cst_31 {dimension_numbers = #tpu.dot_dimension_numbers<[1], [0], [0], [1], [0, 0, 1, 1], [], []>} : vector<8x8xf32>, vector<8x8xf32>, vector<8x8xf32> -> vector<8x8xf32>
    %92 = vector.extract_strided_slice %21 {offsets = [24, 0], sizes = [8, 32], strides = [1, 1]} : vector<32x32xf32> to vector<8x32xf32>
    %cst_32 = arith.constant dense<0.000000e+00> : vector<8x32xf32>
    %93 = tpu.matmul %91, %92, %cst_32 {dimension_numbers = #tpu.dot_dimension_numbers<[1], [0], [0], [1], [0, 0, 1, 1], [], []>} : vector<8x8xf32>, vector<8x32xf32>, vector<8x32xf32> -> vector<8x32xf32>
    %94 = arith.addf %76, %93 : vector<8x32xf32>
    %95 = vector.broadcast %9 : vector<1x32xf32> to vector<8x32xf32>
    %96 = arith.addf %94, %95 : vector<8x32xf32>
    %97 = arith.addf %4, %96 : vector<8x32xf32>
    %cst_33 = arith.constant dense<0.000000e+00> : vector<8xf32>
    %98 = vector.multi_reduction <add>, %97, %cst_33 [1] : vector<8x32xf32> to vector<8xf32>
    %99 = vector.shape_cast %98 : vector<8xf32> to vector<8x1xf32>
    %cst_34 = arith.constant 3.200000e+01 : f32
    %100 = vector.broadcast %cst_34 : f32 to vector<8x1xf32>
    %101 = arith.divf %99, %100 : vector<8x1xf32>
    %102 = arith.mulf %97, %97 : vector<8x32xf32>
    %cst_35 = arith.constant dense<0.000000e+00> : vector<8xf32>
    %103 = vector.multi_reduction <add>, %102, %cst_35 [1] : vector<8x32xf32> to vector<8xf32>
    %104 = vector.shape_cast %103 : vector<8xf32> to vector<8x1xf32>
    %cst_36 = arith.constant 3.200000e+01 : f32
    %105 = vector.broadcast %cst_36 : f32 to vector<8x1xf32>
    %106 = arith.divf %104, %105 : vector<8x1xf32>
    %107 = arith.mulf %101, %101 : vector<8x1xf32>
    %108 = arith.subf %106, %107 : vector<8x1xf32>
    %109 = vector.broadcast %101 : vector<8x1xf32> to vector<8x32xf32>
    %110 = arith.subf %97, %109 : vector<8x32xf32>
    %cst_37 = arith.constant 9.99999974E-6 : f32
    %111 = vector.broadcast %cst_37 : f32 to vector<8x1xf32>
    %112 = arith.addf %108, %111 : vector<8x1xf32>
    %113 = math.rsqrt %112 : vector<8x1xf32>
    %114 = vector.broadcast %113 : vector<8x1xf32> to vector<8x32xf32>
    %115 = arith.mulf %110, %114 : vector<8x32xf32>
    %116 = vector.broadcast %11 : vector<1x32xf32> to vector<8x32xf32>
    %117 = arith.mulf %115, %116 : vector<8x32xf32>
    %118 = vector.broadcast %12 : vector<1x32xf32> to vector<8x32xf32>
    %119 = arith.addf %117, %118 : vector<8x32xf32>
    %c0_38 = arith.constant 0 : index
    %c0_39 = arith.constant 0 : index
    %c0_40 = arith.constant 0 : index
    %120 = vector.load %arg5[%c0_38, %c0_39, %c0_40] : memref<1x32x64xf32, #tpu.memory_space<vmem>>, vector<1x32x64xf32>
    %121 = vector.shape_cast %120 : vector<1x32x64xf32> to vector<32x64xf32>
    %cst_41 = arith.constant dense<0.000000e+00> : vector<8x64xf32>
    %122 = tpu.matmul %119, %121, %cst_41 {dimension_numbers = #tpu.dot_dimension_numbers<[1], [0], [0], [1], [0, 0, 1, 1], [], []>} : vector<8x32xf32>, vector<32x64xf32>, vector<8x64xf32> -> vector<8x64xf32>
    %123 = vector.broadcast %8 : vector<1x64xf32> to vector<8x64xf32>
    %124 = arith.addf %122, %123 : vector<8x64xf32>
    %cst_42 = arith.constant 0.000000e+00 : f32
    %125 = vector.broadcast %cst_42 : f32 to vector<8x64xf32>
    %126 = arith.maximumf %124, %125 : vector<8x64xf32>
    %c0_43 = arith.constant 0 : index
    %c0_44 = arith.constant 0 : index
    %c0_45 = arith.constant 0 : index
    %127 = vector.load %arg6[%c0_43, %c0_44, %c0_45] : memref<1x64x32xf32, #tpu.memory_space<vmem>>, vector<1x64x32xf32>
    %128 = vector.shape_cast %127 : vector<1x64x32xf32> to vector<64x32xf32>
    %cst_46 = arith.constant dense<0.000000e+00> : vector<8x32xf32>
    %129 = tpu.matmul %126, %128, %cst_46 {dimension_numbers = #tpu.dot_dimension_numbers<[1], [0], [0], [1], [0, 0, 1, 1], [], []>} : vector<8x64xf32>, vector<64x32xf32>, vector<8x32xf32> -> vector<8x32xf32>
    %130 = vector.broadcast %10 : vector<1x32xf32> to vector<8x32xf32>
    %131 = arith.addf %129, %130 : vector<8x32xf32>
    %132 = arith.addf %119, %131 : vector<8x32xf32>
    %cst_47 = arith.constant dense<0.000000e+00> : vector<8xf32>
    %133 = vector.multi_reduction <add>, %132, %cst_47 [1] : vector<8x32xf32> to vector<8xf32>
    %134 = vector.shape_cast %133 : vector<8xf32> to vector<8x1xf32>
    %cst_48 = arith.constant 3.200000e+01 : f32
    %135 = vector.broadcast %cst_48 : f32 to vector<8x1xf32>
    %136 = arith.divf %134, %135 : vector<8x1xf32>
    %137 = arith.mulf %132, %132 : vector<8x32xf32>
    %cst_49 = arith.constant dense<0.000000e+00> : vector<8xf32>
    %138 = vector.multi_reduction <add>, %137, %cst_49 [1] : vector<8x32xf32> to vector<8xf32>
    %139 = vector.shape_cast %138 : vector<8xf32> to vector<8x1xf32>
    %cst_50 = arith.constant 3.200000e+01 : f32
    %140 = vector.broadcast %cst_50 : f32 to vector<8x1xf32>
    %141 = arith.divf %139, %140 : vector<8x1xf32>
    %142 = arith.mulf %136, %136 : vector<8x1xf32>
    %143 = arith.subf %141, %142 : vector<8x1xf32>
    %144 = vector.broadcast %136 : vector<8x1xf32> to vector<8x32xf32>
    %145 = arith.subf %132, %144 : vector<8x32xf32>
    %cst_51 = arith.constant 9.99999974E-6 : f32
    %146 = vector.broadcast %cst_51 : f32 to vector<8x1xf32>
    %147 = arith.addf %143, %146 : vector<8x1xf32>
    %148 = math.rsqrt %147 : vector<8x1xf32>
    %149 = vector.broadcast %148 : vector<8x1xf32> to vector<8x32xf32>
    %150 = arith.mulf %145, %149 : vector<8x32xf32>
    %151 = vector.broadcast %13 : vector<1x32xf32> to vector<8x32xf32>
    %152 = arith.mulf %150, %151 : vector<8x32xf32>
    %153 = vector.broadcast %14 : vector<1x32xf32> to vector<8x32xf32>
    %154 = arith.addf %152, %153 : vector<8x32xf32>
    %c0_52 = arith.constant 0 : index
    %c0_53 = arith.constant 0 : index
    %c0_54 = arith.constant 0 : index
    %155 = vector.load %arg8[%c0_52, %c0_53, %c0_54] : memref<1x8x32xf32, #tpu.memory_space<vmem>>, vector<1x8x32xf32>
    %156 = vector.shape_cast %155 : vector<1x8x32xf32> to vector<8x32xf32>
    %157 = vector.shape_cast %154 : vector<8x32xf32> to vector<1x8x32xf32>
    tpu.vector_store %arg8[%c0_52, %c0_53, %c0_54], %157 {strides = array<i32>} : memref<1x8x32xf32, #tpu.memory_space<vmem>>, vector<1x8x32xf32>,
    return
  }
  func.func @transform_0(%arg0: i32, %arg1: i32) -> (i32, i32, i32) {
    %c0_i32 = arith.constant 0 : i32
    %c0_i32_0 = arith.constant 0 : i32
    %c0_i32_1 = arith.constant 0 : i32
    return %arg0, %c0_i32, %c0_i32_0 : i32, i32, i32
  }
  func.func @transform_1(%arg0: i32, %arg1: i32) -> (i32, i32, i32) {
    %c0_i32 = arith.constant 0 : i32
    %c0_i32_0 = arith.constant 0 : i32
    %c0_i32_1 = arith.constant 0 : i32
    return %arg1, %c0_i32, %c0_i32_0 : i32, i32, i32
  }
  func.func @transform_2(%arg0: i32, %arg1: i32) -> (i32, i32, i32) {
    %c0_i32 = arith.constant 0 : i32
    %c0_i32_0 = arith.constant 0 : i32
    %c0_i32_1 = arith.constant 0 : i32
    return %arg1, %c0_i32, %c0_i32_0 : i32, i32, i32
  }
  func.func @transform_3(%arg0: i32, %arg1: i32) -> (i32, i32, i32) {
    %c0_i32 = arith.constant 0 : i32
    %c0_i32_0 = arith.constant 0 : i32
    %c0_i32_1 = arith.constant 0 : i32
    return %arg1, %c0_i32, %c0_i32_0 : i32, i32, i32
  }
  func.func @transform_4(%arg0: i32, %arg1: i32) -> (i32, i32, i32) {
    %c0_i32 = arith.constant 0 : i32
    %c0_i32_0 = arith.constant 0 : i32
    %c0_i32_1 = arith.constant 0 : i32
    return %arg1, %c0_i32, %c0_i32_0 : i32, i32, i32
  }
  func.func @transform_5(%arg0: i32, %arg1: i32) -> (i32, i32, i32) {
    %c0_i32 = arith.constant 0 : i32
    %c0_i32_0 = arith.constant 0 : i32
    %c0_i32_1 = arith.constant 0 : i32
    return %arg1, %c0_i32, %c0_i32_0 : i32, i32, i32
  }
  func.func @transform_6(%arg0: i32, %arg1: i32) -> (i32, i32, i32) {
    %c0_i32 = arith.constant 0 : i32
    %c0_i32_0 = arith.constant 0 : i32
    %c0_i32_1 = arith.constant 0 : i32
    return %arg0, %c0_i32, %c0_i32_0 : i32, i32, i32
  }
}

</mosaic_0001>

<bundles_post_ra>
// kernel: tpu_custom_call.1
= control target key start
LH: loop header
LB: loop body
LE: loop exit
PB: predicated region body
PF: predicated region fallthrough
CT: control target
= control target key end

     0   :  { %s2818_s0 = inlined_call_operand.hbm [shape: f32[2,8,32], index: 0, kind: input, shape index: {}]   ;;  %s2819_s1 = inlined_call_operand.vmem [shape: f32[2,32,96], index: 1, kind: input, shape index: {}]   ;;  %s2820_s2 = inlined_call_operand.vmem [shape: f32[2,32,32], index: 2, kind: input, shape index: {}]   ;;  %s2821_s3 = inlined_call_operand.vmem [shape: f32[2,32,64], index: 3, kind: input, shape index: {}]   ;;  %s2822_s4 = inlined_call_operand.vmem [shape: f32[2,64,32], index: 4, kind: input, shape index: {}]   ;;  %s2823_s5 = inlined_call_operand.hbm [shape: f32[2,8,96], index: 5, kind: input, shape index: {}]   ;;  %s2824_s6 = inlined_call_operand.hbm [shape: f32[2,8,32], index: 6, kind: output, shape index: {}]  }
   0x1   :  { %2837 = sst [smem:[#allocation19_spill]] %s2818_s0 }
   0x2   :  { %2838 = sst [smem:[#allocation20_spill]] %s2822_s4 }
   0x3   :  { %2839 = sst [smem:[#allocation21_spill]] %s2823_s5 }
   0x4   :  { %2840 = sst [smem:[#allocation22_spill]] %s2824_s6 }
   0x5   :  { %11 = vsyncpa [#allocation3], 0 }
   0x6   :  { %13 = vsyncpa [#allocation3 + $0x1], 0 }
   0x7   :  { %14 = vsyncpa [#allocation6], 0 }
   0x8   :  { %16 = vsyncpa [#allocation6 + $0x1], 0 }
   0x9   :  { %17 = vsyncpa [#allocation4], 0 }
   0xa   :  { %19 = vsyncpa [#allocation4 + $0x1], 0  ;;  %s2403_s21 = smov 0   ;;  %s2405_s22 = smov 0  }
   0xb   :  { %s2407_s23 = smov 0   ;;  %s2409_s24 = smov 0  }
   0xc   :  { %s2411_s25 = smov 0   ;;  %s2413_s26 = smov 0  }
   0xd   :  { %s2415_s27 = smov 0   ;;  %s2417_s28 = smov 0  }
   0xe   :  { %s2419_s29 = smov 0   ;;  %s2421_s30 = smov 0  }
   0xf   :  { %s2423_s7 = smov 0  }
  0x10 LB: > { %2841 = sst [smem:[#allocation11_spill]] %s2322_s24  ;;  %s1838_s8 = sadd.s32 4294967295, %s2350_s7   ;;  %s2350_s7 = sphi %s2423_s7, %s25_s7   ;;  %s2346_s30 = sphi %s2421_s30, %s2877_s30   ;;  %s2342_s29 = sphi %s2419_s29, %s2876_s29   ;;  %s2338_s28 = sphi %s2417_s28, %s2875_s28   ;;  %s2334_s27 = sphi %s2415_s27, %s2874_s27   ;;  %s2330_s26 = sphi %s2413_s26, %s2883_s26   ;;  %s2326_s25 = sphi %s2411_s25, %s2882_s25   ;;  %s2322_s24 = sphi %s2409_s24, %s2881_s24   ;;  %s2318_s23 = sphi %s2407_s23, %s2880_s23   ;;  %s2314_s22 = sphi %s2405_s22, %s2879_s22   ;;  %s2310_s21 = sphi %s2403_s21, %s2878_s21  }
  0x11   : > { %2842 = sst [smem:[#allocation12_spill]] %s2338_s28  ;;  %s1839_s9 = sadd.s32 4294967294, %s2350_s7  }
  0x12   : > { %2843 = sst [smem:[#allocation13_spill]] %s2342_s29  ;;  %p51_p0 = scmp.ne.s32.totalorder %s2330_s26, %s2326_s25 }
  0x13   : > { %2844 = sst [smem:[#allocation14_spill]] %s2346_s30  ;;  %p2828_p1 = scmp.eq.s32.totalorder %s2350_s7, 0 }
  0x14   : > { %p57_p2 = scmp.ne.s32.totalorder %s2326_s25, %s2322_s24  ;;  %p2467_p3 = scmp.eq.s32.totalorder %s1838_s8, 0 }
  0x15   : > { %p2473_p4 = por %p2828_p1, %p51_p0  ;;  %p211_p5 = scmp.eq.s32.totalorder %s1838_s8, 3 }
  0x16   : > { %p2479_p6 = por %p2467_p3, %p57_p2  ;;  %p217_p7 = scmp.eq.s32.totalorder %s1839_s9, 3 }
  0x17   : > { %p2483_p8 = por %p211_p5, %p51_p0  ;;  %p2829_p10 = scmp.lt.s32.totalorder %s2350_s7, 4 }
  0x18   : > { %p2487_p9 = por %p217_p7, %p57_p2  ;;  %s237_s17 = sand.u32 1, %s2330_s26  }
  0x19   : > { %s2848_s15 = scalar_select %p2483_p8, 1, 0 }
  0x1a   : > { %s2850_s16 = scalar_select %p2487_p9, 1, 0 }
  0x1b   : > { %2849 = sst [smem:[#allocation15_spill]] %s2848_s15  ;;  %s1843_s18 = sshll.u32 %s2346_s30, 7 }
  0x1c   : > { %2851 = sst [smem:[#allocation16_spill]] %s2850_s16  ;;  %s1842_s19 = sshll.u32 %s237_s17, 3 }
  0x1d   : > { %s2852_s0 = sld [smem:[#allocation19_spill]]  ;;  %s241_s10 = scalar_lea.vmem [#allocation2], %s1842_s19 }
  0x1e   : > { %s248_s24 = sshll.u32 %s241_s10, 4  ;;  %p2501_p11 = pnand %p2829_p10, %p2473_p4  ;;  %s249_s24 = int_to_ptr.vmem [resolvable:$true] %s248_s24 }
  0x1f   : > { %p1846_p12 = scmp.ge.s32.totalorder %s2350_s7, 1  ;;  %p303_p13 = scmp.lt.s32.totalorder %s2350_s7, 5 }
  0x20   : > { %s238_s16 = scalar_lea.sflag [#allocation3], %s237_s17  ;;  %p2172_p0 = pneg %p2501_p11 }
  0x21   : > { %s2183_s6 = scalar_lea.vmem %s249_s24, 128 }
  0x22   : > { %p2184_p2 = scmp.ne.s32.totalorder %s249_s24, %s2183_s6 }
  0x23   : > { %s246_s11 = scalar_lea.hbm %s2852_s0, %s1843_s18  ;;  %s2352_s18 = smov [#allocation2]  }
  0x24   : > { %p2186_p5 = pnand %p2184_p2, %p2172_p0  ;;  %s2188_s19 = sshll.u32 %s2352_s18, 4  ;;  %s2189_s19 = int_to_ptr.vmem [resolvable:$false] %s2188_s19 }
  0x25   : > { %s2190_s10 = scalar_lea.vmem %s2189_s19, 256  ;;  %p2191_p1 = scmp.lt.s32.totalorder %s249_s24, %s2189_s19 }
  0x26   : > { %p2187_p7 = pneg %p2186_p5  ;;  %p2192_p4 = scmp.lt.s32.totalorder %s2190_s10, %s2183_s6 }
  0x28   : > { %p2193_p10 = por %p2192_p4, %p2191_p1 }
  0x2a   : > { %p2194_p9 = pnand %p2193_p10, %p2187_p7 }
  0x2c   : > { %2197 = shalt.err (!%p2194_p9)
}
  0x2d   : > { %2039 = dma.hbm_to_vmem [thread:$0]  (!%p2501_p11), %s246_s11, 128, %s249_s24, %s238_s16  }
  0x2e   : > { %p2515_p1 = pnand %p1846_p12, %p303_p13  ;;  %s34_s13 = sadd.s32 1, %s2342_s29 }
  0x2f   : > { %p35_p9 = scmp.ge.s32.totalorder %s34_s13, 2  ;;  %s174_s17 = sadd.s32 1, %s2318_s23 }
  0x30   : > { %p181_p10 = scmp.ne.s32.totalorder %s2318_s23, %s2314_s22  ;;  %p187_p0 = scmp.ne.s32.totalorder %s2314_s22, %s2310_s21 }
  0x31   : > { %s2885_s13 = smov (%p35_p9, %s34_s13), 0  ;;  %s2856_s20 = sadd.s32 1, %s2346_s30 }
  0x32   : > { %2855 = sst [smem:[#allocation17_spill]] %s2885_s13  ;;  %s2887_s20 = smov (!%p35_p9, %s2856_s20), %s2346_s30 }
  0x33   : > { %s171_s24 = ssub.s32 %s2342_s29, %s2885_s13  ;;  %p2857_p11 = scmp.eq.s32.totalorder %s2350_s7, 0 }
  0x34   : > { %p39_p13 = scmp.ge.s32.totalorder %s2887_s20, 2  ;;  %p172_p2 = scmp.eq.s32.totalorder %s171_s24, 0 }
  0x35   : > { %p2534_p12 = por %p181_p10, %p2857_p11  ;;  %p2540_p5 = por %p187_p0, %p2467_p3 }
  0x36   : > { %s287_s21 = sand.u32 1, %s2318_s23   ;;  %s2889_s20 = smov (%p39_p13, %s2887_s20), 0 }
  0x37   : > { %2860 = sst [smem:[#allocation18_spill]] %s2889_s20  ;;  %s41_s9 = ssub.s32 %s2346_s30, %s2889_s20 }
  0x38   : > { %s2548_s8 = scalar_select %p172_p2, %s2318_s23, %s174_s17  }
  0x39   : > { %p42_p7 = scmp.eq.s32.totalorder %s41_s9, 0  ;;  %s1844_s18 = sshll.u32 %s287_s21, 3 }
  0x3a   : > { %s1845_s19 = sshll.u32 %s2342_s29, 7  ;;  %s2861_s10 = sadd.s32 1, %s2330_s26 }
  0x3b   : > { %s2556_s0 = scalar_select %p42_p7, %s2330_s26, %s2861_s10  }
  0x3c   : > { %s2862_s5 = sld [smem:[#allocation21_spill]]  ;;  %s291_s15 = scalar_lea.vmem [#allocation5], %s1844_s18 }
  0x3d   : > { %s298_s28 = sshll.u32 %s291_s15, 4  ;;  %p2863_p3 = scmp.lt.s32.totalorder %s2350_s7, 4  ;;  %s299_s28 = int_to_ptr.vmem [resolvable:$true] %s298_s28 }
  0x3e   : > { %s288_s17 = scalar_lea.sflag [#allocation6], %s287_s21  ;;  %s2211_s9 = scalar_lea.vmem %s299_s28, 128 }
  0x3f   : > { %p2565_p4 = pnand %p2863_p3, %p2534_p12  ;;  %p2212_p10 = scmp.ne.s32.totalorder %s299_s28, %s2211_s9 }
  0x40   : > { %s2353_s10 = smov [#allocation5]  }
  0x41   : > { %p2200_p9 = pneg %p2565_p4  ;;  %s2216_s13 = sshll.u32 %s2353_s10, 4  ;;  %s2217_s13 = int_to_ptr.vmem [resolvable:$false] %s2216_s13 }
  0x42   : > { %s296_s12 = scalar_lea.hbm %s2862_s5, %s1845_s19  ;;  %s2218_s18 = scalar_lea.vmem %s2217_s13, 256 }
  0x43   : > { %p2214_p0 = pnand %p2212_p10, %p2200_p9  ;;  %p2219_p13 = scmp.lt.s32.totalorder %s299_s28, %s2217_s13 }
  0x44   : > { %p2220_p2 = scmp.lt.s32.totalorder %s2218_s18, %s2211_s9 }
  0x45   : > { %p2215_p11 = pneg %p2214_p0 }
  0x46   : > { %p2221_p7 = por %p2220_p2, %p2219_p13 }
  0x48   : > { %p2222_p8 = pnand %p2221_p7, %p2215_p11 }
  0x4a   : > { %2225 = shalt.err (!%p2222_p8)
}
  0x4b   : > { %2042 = dma.hbm_to_vmem [thread:$0]  (!%p2565_p4), %s296_s12, 128, %s299_s28, %s288_s17  }
  0x4c   : > { %307 = sbr.rel (%p2515_p1) target bundleno = 3274 (0xcca), region = 44  ;;  %s2576_s15 = sand.u32 (!%p2515_p1), 1, %s2326_s25  }
  0x4d   : > { %s1847_s11 = sshll.u32 (!%p2515_p1), %s2576_s15, 3  ;;  %s310_s21 = scalar_lea.sflag (!%p2515_p1), [#allocation3], %s2576_s15 }
  0x4e   : > { %s313_s19 = scalar_lea.vmem (!%p2515_p1), [#allocation2], %s1847_s11 }
  0x51   : > { %2297 = dma.done.wait (%p2479_p6), %s310_s21, 128  }
  0x52   : > { %2299 = vsyncadd (%p2479_p6), %s310_s21, 4294967168  ;;  %s318_s4 = sand.u32 1, %s2314_s22  }
  0x53   : > { %s2585_s28 = sshll.u32 %s318_s4, 3  ;;  %s319_s6 = scalar_lea.sflag [#allocation6], %s318_s4 }
  0x54   : > { %2301 = dma.done.wait (%p2540_p5), %s319_s6, 128  }
  0x55   : > { %2303 = vsyncadd (%p2540_p5), %s319_s6, 4294967168  ;;  %p376_p8 = scmp.lt.s32.totalorder %s2334_s27, 1  ;;  %s2865_s30 = sld [smem:[#allocation20_spill]] }
  0x56   : > { %p1858_p6 = scmp.ne.s32.totalorder %s2334_s27, 0 }
  0x57   : > { %s377_s12 = scalar_select %p376_p8, %s2334_s27, 1 }
  0x58   : > { %399 = sbr.rel (%p1858_p6) target bundleno = 95 (0x5f), region = 56 }
  0x59   : > { %s1882_s17 = sshll.u32 %s377_s12, 5  ;;  %s1885_s14 = sshll.u32 %s377_s12, 6 }
  0x5a   : > { %s380_s13 = scalar_lea.vmem %s2819_s1, %s1882_s17  ;;  %s2600_s4 = scalar_lea.vmem %s2820_s2, %s1882_s17 }
  0x5b   : > { %s2605_s16 = scalar_lea.vmem %s2821_s3, %s1882_s17  ;;  %s2610_s29 = scalar_lea.vmem %s2865_s30, %s1885_s14 }
  0x5c   : > { %s2612_s12 = scalar_lea.vmem [#allocation7], %s1847_s11 }
  0x5d   : > { %v400_v0 = vld [vmem:[%s313_s19] sm:$0xff]  ;;  %vm401_vm0 = vcmask 261120  }
  0x5e   : > { %402 = vst.msk [vmem:[%s2612_s12] sm:$0xff] %vm401_vm0, %v400_v0 }
  0x5f PF: > { %v408_v1 = vld [vmem:[%s380_s13 + $0x18] sm:$0xff]  ;;  %v2354_v2 = vmov 0.0   ;;  %v407_v3 = vld [vmem:[%s380_s13 + $0x10] sm:$0xff]  ;;  %vm2355_vm1 = vmmov 0   ;;  %v406_v4 = vld [vmem:[%s380_s13 + $0x8] sm:$0xff]  ;;  %vm413_vm2 = vcmask 261120   ;;  %v409_v7 = vlaneseq }
  0x60   : > { %1929 = vmatprep.subr.mxu0 %v2354_v2  ;;  %1937 = vmatprep.mubr.msk.f32.mxu0 %vm2355_vm1, %v2354_v2  ;;  %v405_v5 = vld [vmem:[%s380_s13] sm:$0xff]  ;;  %s2866_s5 = scalar_lea.vmem [#allocation5], %s2585_s28  ;;  %s2356_s27 = smov 120   ;;  %vm494_vm3 = vcmask 64512   ;;  %v488_v43 = vld [vmem:[%s2600_s4 + $0x8] sm:$0xff]  ;;  %vm1571_vm4 = vcmask 523264  }
  0x61   : > { %1930 = vmatpush3.msra.mxu0 %v408_v1  ;;  %1945 = vmatprep.subr.mxu1 %v2354_v2  ;;  %v2633_v8 = vshrl.u32 %v409_v7, 7  ;;  %v2638_v10 = vld [vmem:[%s2866_s5] sm:$0xff]  ;;  %s2357_s30 = smov 96   ;;  %s2358_s20 = smov 88   ;;  %v487_v42 = vld [vmem:[%s2600_s4] sm:$0xff] }
  0x62   : > { %1931 = vmatprep.subr.mxu0 %v2354_v2  ;;  %1947 = vmatprep.mubr.msk.f32.mxu1 %vm2355_vm1, %v2354_v2  ;;  %s2359_s11 = smov 56   ;;  %s2360_s19 = smov 64   ;;  %v489_v7 = vld [vmem:[%s2600_s4 + $0x10] sm:$0xff] }
  0x63   : > { %1932 = vmatpush3.msra.mxu0 %v407_v3  ;;  %v411_v9 = vsub.s32 0, %v2633_v8  ;;  %s2361_s28 = smov 80   ;;  %s2362_s24 = smov 112  }
  0x64   : > { %1933 = vmatprep.subr.mxu0 %v2354_v2  ;;  %s2363_s17 = smov 72   ;;  %s2364_s14 = smov 104  }
  0x65   : > { %1934 = vmatpush3.msra.mxu0 %v406_v4  ;;  %v2625_v6 = vld [vmem:[%s2612_s12] sm:$0xff]  ;;  %v412_v11 = vrot.slane %v2638_v10, %v411_v9  ;;  %s2365_s9 = smov 48   ;;  %s2366_s10 = smov 40  }
  0x66   : > { %1935 = vmatprep.subr.mxu0 %v2354_v2  ;;  %s2868_s13 = sld [smem:[#allocation15_spill]]  ;;  %s1686_s21 = sshll.u32 %s2612_s12, 4  ;;  %s1687_s21 = int_to_ptr.vmem [resolvable:$true] %s1686_s21 }
  0x67   : > { %1936 = vmatpush3.msra.mxu0 %v405_v5  ;;  %s2869_s6 = sld [smem:[#allocation22_spill]] }
  0x68   : > { %1938 = vmatmul.mubr.msk.f32.vlgmr.msra.gmra.mxu0 %vm413_vm2, %v2625_v6  ;;  %1940 = vmatprep.subr.mxu0 %v2354_v2 }
  0x69   : > { %1942 = vmatprep.mubr.msk.f32.mxu0 %vm2355_vm1, %v2354_v2 }
  0x6c   : > { %p2870_p12 = scmp.ne.s32.totalorder %s2868_s13, 0 }
 0x128   : > { %v483_v12 = vpop.f32.mrf.mxu0 }
 0x129   : > { %v2641_v13 = vadd.f32 %v483_v12, %v412_v11 }
 0x12a   : > { %v1939_v14 = vpop.f32.mrf.mxu0 }
 0x12b   : > { %656 = vrot.lane.b32.xlu1 %v2641_v13, %s2356_s27  ;;  %492 = vrot.lane.b32.xlu0 %v2641_v13, %s2357_s30  ;;  %s1673_s27 = scalar_lea.sflag [#allocation4], %s2576_s15  ;;  %s2226_s30 = scalar_lea.vmem %s1687_s21, 128 }
 0x12c   : > { %p2227_p1 = scmp.ne.s32.totalorder %s1687_s21, %s2226_s30 }
 0x12e   : > { %p2228_p5 = pnand %p2227_p1, %p2870_p12 }
 0x12f   : > { %658 = vrot.lane.b32.xlu0 %v2641_v13, %s2358_s20  ;;  %s2367_s20 = smov [#allocation7]  }
 0x130   : > { %p2229_p3 = pneg %p2228_p5 }
 0x19d   : > { %v493_v15 = vpop.permute.xlu0 %492  ;;  %v657_v17 = vpop.permute.xlu1 %656 }
 0x19e   : > { %1941 = vmatpush3.xpose.msk.msra.mxu0 %vm494_vm3, %v493_v15 }
 0x19f   : > { %1950 = vmatprep.subr.mxu0 %v2354_v2 }
 0x1a1   : > { %1943 = vmatmul.mubr.msk.f32.vlgmr.msra.gmra.mxu0 %vm494_vm3, %v2641_v13  ;;  %v659_v16 = vpop.permute.xlu0 %658 }
 0x1a2   : > { %1951 = vmatpush3.xpose.msk.msra.mxu0 %vm494_vm3, %v659_v16  ;;  %1952 = vmatprep.mubr.msk.f32.mxu0 %vm2355_vm1, %v2354_v2 }
 0x1a3   : > { %1960 = vmatprep.subr.mxu0 %v2354_v2 }
 0x1a5   : > { %1953 = vmatmul.mubr.msk.f32.vlgmr.msra.gmra.mxu0 %vm494_vm3, %v657_v17 }
 0x1a6   : > { %1962 = vmatprep.mubr.msk.f32.mxu0 %vm2355_vm1, %v2354_v2  ;;  %1961 = vmatpush3.msra.mxu0 %v488_v43  ;;  %v1566_v43 = vld [vmem:[%s2610_s29 + $0x38] sm:$0xff] }
 0x1a7   : > { %1970 = vmatprep.subr.mxu0 %v2354_v2 }
 0x261   : > { %v565_v18 = vpop.f32.mrf.mxu0 }
 0x262   : > { %v569_v19 = vsel %vm494_vm3, %v565_v18, -inf }
 0x263   : > { %570 = vmax.xlane.f32.xlu1 %v569_v19  ;;  %v1944_v20 = vpop.f32.mrf.mxu0 }
 0x265   : > { %v730_v21 = vpop.f32.mrf.mxu0 }
 0x266   : > { %v734_v22 = vsel %vm494_vm3, %v730_v21, -inf }
 0x267   : > { %735 = vmax.xlane.f32.xlu0 %v734_v22  ;;  %v1954_v23 = vpop.f32.mrf.mxu0  ;;  %v490_v22 = vld [vmem:[%s2600_s4 + $0x18] sm:$0xff] }
 0x2ec   : > { %v571_v24 = vpop.xlane.xlu1 %570 }
 0x2ed   : > { %v572_v25 = vsub.f32 %v565_v18, %v571_v24 }
 0x2ef   : > { %v573_v26 = vmul.f32 1.442695, %v572_v25 }
 0x2f0   : > { %v736_v27 = vpop.xlane.xlu0 %735 }
 0x2f1   : > { %2150 = vpow2.f32 %v573_v26  ;;  %v737_v28 = vsub.f32 %v730_v21, %v736_v27 }
 0x2f3   : > { %v738_v29 = vmul.f32 1.442695, %v737_v28 }
 0x2f5   : > { %2152 = vpow2.f32 %v738_v29 }
 0x2fe   : > { %v2151_v30 = vpop.eup %2150 }
 0x2ff   : > { %v575_v31 = vsel %vm494_vm3, %v2151_v30, 0.0 }
 0x300   : > { %576 = vadd.xlane.f32.xlu0 %v575_v31 }
 0x302   : > { %v2153_v32 = vpop.eup %2152 }
 0x303   : > { %v740_v33 = vsel %vm494_vm3, %v2153_v32, 0.0 }
 0x304   : > { %741 = vadd.xlane.f32.xlu1 %v740_v33 }
 0x315   : > { %745 = vrot.lane.b32.xlu1 %v2641_v13, %s2359_s11  ;;  %s2230_s11 = sshll.u32 %s2367_s20, 4  ;;  %s2231_s11 = int_to_ptr.vmem [resolvable:$false] %s2230_s11 }
 0x316   : > { %580 = vrot.lane.b32.xlu0 %v2641_v13, %s2360_s19  ;;  %s2232_s19 = scalar_lea.vmem %s2231_s11, 256  ;;  %p2233_p4 = scmp.lt.s32.totalorder %s1687_s21, %s2231_s11 }
 0x317   : > { %p2234_p9 = scmp.lt.s32.totalorder %s2232_s19, %s2226_s30 }
 0x319   : > { %969 = vrot.lane.b32.xlu1 %v2641_v13, %s2361_s28  ;;  %p2235_p10 = por %p2234_p9, %p2233_p4 }
 0x31a   : > { %967 = vrot.lane.b32.xlu0 %v2641_v13, %s2362_s24 }
 0x31b   : > { %p2236_p0 = pnand %p2235_p10, %p2229_p3 }
 0x389   : > { %v577_v34 = vpop.xlane.xlu0 %576 }
 0x38a   : > { %2154 = vrcp.f32 %v577_v34 }
 0x38d   : > { %v742_v35 = vpop.xlane.xlu1 %741  ;;  %v581_v36 = vpop.permute.xlu0 %580 }
 0x38e   : > { %2156 = vrcp.f32 %v742_v35  ;;  %1946 = vmatpush3.msra.mxu1 %v581_v36 }
 0x38f   : > { %1955 = vmatprep.subr.mxu1 %v2354_v2 }
 0x391   : > { %v746_v39 = vpop.permute.xlu1 %745  ;;  %v968_v49 = vpop.permute.xlu0 %967 }
 0x395   : > { %v970_v47 = vpop.permute.xlu1 %969 }
 0x397   : > { %v2155_v37 = vpop.eup %2154 }
 0x398   : > { %v579_v38 = vmul.f32 %v2155_v37, %v2151_v30  ;;  %v1447_v30 = vsub.s32 2, %v2633_v8 }
 0x39a   : > { %1948 = vmatmul.mubr.msk.f32.vlgmr.msra.gmra.mxu1 %vm494_vm3, %v579_v38  ;;  %v1448_v31 = vrot.slane %v2638_v10, %v1447_v30 }
 0x39b   : > { %v2157_v40 = vpop.eup %2156  ;;  %1956 = vmatpush3.msra.mxu1 %v746_v39  ;;  %1957 = vmatprep.mubr.msk.f32.mxu1 %vm2355_vm1, %v2354_v2 }
 0x39c   : > { %v744_v41 = vmul.f32 %v2157_v40, %v2153_v32  ;;  %1965 = vmatprep.subr.mxu1 %v2354_v2  ;;  %v1480_v40 = vld [vmem:[%s2605_s16 + $0x18] sm:$0xff] }
 0x39e   : > { %1958 = vmatmul.mubr.msk.f32.vlgmr.msra.gmra.mxu1 %vm494_vm3, %v744_v41  ;;  %v1479_v41 = vld [vmem:[%s2605_s16 + $0x10] sm:$0xff] }
 0x39f   : > { %1967 = vmatprep.mubr.msk.f32.mxu1 %vm2355_vm1, %v2354_v2  ;;  %1966 = vmatpush3.msra.mxu1 %v487_v42  ;;  %v1478_v42 = vld [vmem:[%s2605_s16 + $0x8] sm:$0xff] }
 0x3a0   : > { %1975 = vmatprep.subr.mxu1 %v2354_v2 }
 0x45a   : > { %v652_v44 = vpop.f32.mrf.mxu1 }
 0x45b   : > { %1968 = vmatmul.mubr.msk.f32.vlgmr.msra.gmra.mxu1 %vm494_vm3, %v652_v44  ;;  %v1565_v44 = vld [vmem:[%s2610_s29 + $0x30] sm:$0xff] }
 0x45c   : > { %v1949_v45 = vpop.f32.mrf.mxu1  ;;  %1977 = vmatprep.mubr.msk.f32.mxu1 %vm2355_vm1, %v2354_v2 }
 0x45d   : > { %v1564_v45 = vld [vmem:[%s2610_s29 + $0x28] sm:$0xff] }
 0x45e   : > { %v817_v46 = vpop.f32.mrf.mxu1 }
 0x45f   : > { %1963 = vmatmul.mubr.msk.f32.vlgmr.msra.gmra.mxu0 %vm494_vm3, %v817_v46  ;;  %v1563_v46 = vld [vmem:[%s2610_s29 + $0x20] sm:$0xff] }
 0x460   : > { %1971 = vmatpush3.xpose.msk.msra.mxu0 %vm494_vm3, %v970_v47  ;;  %v1959_v48 = vpop.f32.mrf.mxu1  ;;  %1972 = vmatprep.mubr.msk.f32.mxu0 %vm2355_vm1, %v2354_v2  ;;  %v1562_v47 = vld [vmem:[%s2610_s29 + $0x18] sm:$0xff] }
 0x461   : > { %1980 = vmatprep.subr.mxu0 %v2354_v2 }
 0x463   : > { %1973 = vmatmul.mubr.msk.f32.vlgmr.msra.gmra.mxu0 %vm494_vm3, %v968_v49 }
 0x464   : > { %1982 = vmatprep.mubr.msk.f32.mxu0 %vm2355_vm1, %v2354_v2  ;;  %1981 = vmatpush3.msra.mxu0 %v489_v7 }
 0x465   : > { %1990 = vmatprep.subr.mxu0 %v2354_v2 }
 0x51b   : > { %v963_v50 = vpop.f32.mrf.mxu1 }
 0x51d   : > { %v1969_v51 = vpop.f32.mrf.mxu1 }
 0x51f   : > { %v890_v52 = vpop.f32.mrf.mxu0 }
 0x520   : > { %v964_v53 = vadd.f32 %v963_v50, %v890_v52 }
 0x521   : > { %v1964_v54 = vpop.f32.mrf.mxu0 }
 0x523   : > { %v1041_v55 = vpop.f32.mrf.mxu0 }
 0x524   : > { %v1045_v56 = vsel %vm494_vm3, %v1041_v55, -inf }
 0x525   : > { %1046 = vmax.xlane.f32.xlu1 %v1045_v56  ;;  %v1974_v57 = vpop.f32.mrf.mxu0  ;;  %v1474_v56 = vsub.s32 5, %v2633_v8 }
 0x536   : > { %1208 = vrot.lane.b32.xlu1 %v2641_v13, %s2363_s17 }
 0x53a   : > { %1206 = vrot.lane.b32.xlu1 %v2641_v13, %s2364_s14 }
 0x5ae   : > { %v1047_v58 = vpop.xlane.xlu1 %1046 }
 0x5af   : > { %v1048_v59 = vsub.f32 %v1041_v55, %v1047_v58  ;;  %v1469_v55 = vsub.s32 4, %v2633_v8 }
 0x5b1   : > { %v1049_v60 = vmul.f32 1.442695, %v1048_v59  ;;  %v1470_v58 = vrot.slane %v2638_v10, %v1469_v55 }
 0x5b2   : > { %v1209_v3 = vpop.permute.xlu1 %1208 }
 0x5b3   : > { %2158 = vpow2.f32 %v1049_v60 }
 0x5b6   : > { %v1207_v5 = vpop.permute.xlu1 %1206 }
 0x5c0   : > { %v2159_v61 = vpop.eup %2158 }
 0x5c1   : > { %v1051_v62 = vsel %vm494_vm3, %v2159_v61, 0.0 }
 0x5c2   : > { %1052 = vadd.xlane.f32.xlu0 %v1051_v62 }
 0x5d8   : > { %1056 = vrot.lane.b32.xlu0 %v2641_v13, %s2365_s9 }
 0x64b   : > { %v1053_v63 = vpop.xlane.xlu0 %1052 }
 0x64c   : > { %2160 = vrcp.f32 %v1053_v63 }
 0x64f   : > { %v1057_v0 = vpop.permute.xlu0 %1056 }
 0x650   : > { %1976 = vmatpush3.msra.mxu1 %v1057_v0  ;;  %v1561_v0 = vld [vmem:[%s2610_s29 + $0x10] sm:$0xff] }
 0x651   : > { %1985 = vmatprep.subr.mxu1 %v2354_v2 }
 0x659   : > { %v2161_v1 = vpop.eup %2160 }
 0x65a   : > { %v1055_v4 = vmul.f32 %v2161_v1, %v2159_v61  ;;  %v1475_v61 = vrot.slane %v2638_v10, %v1474_v56  ;;  %v1560_v1 = vld [vmem:[%s2610_s29 + $0x8] sm:$0xff] }
 0x65c   : > { %1978 = vmatmul.mubr.msk.f32.vlgmr.msra.gmra.mxu1 %vm494_vm3, %v1055_v4  ;;  %v1483_v4 = vsub.s32 1, %v2633_v8 }
 0x65d   : > { %1986 = vmatpush3.xpose.msk.msra.mxu1 %vm494_vm3, %v1209_v3  ;;  %1987 = vmatprep.mubr.msk.f32.mxu1 %vm2355_vm1, %v2354_v2  ;;  %v1559_v3 = vld [vmem:[%s2610_s29] sm:$0xff]  ;;  %s2867_s29 = sld [smem:[#allocation12_spill]] }
 0x65e   : > { %1995 = vmatprep.subr.mxu1 %v2354_v2 }
 0x660   : > { %1988 = vmatmul.mubr.msk.f32.vlgmr.msra.gmra.mxu1 %vm494_vm3, %v1207_v5  ;;  %v1484_v5 = vrot.slane %v2638_v10, %v1483_v4 }
 0x661   : > { %1997 = vmatprep.mubr.msk.f32.mxu1 %vm2355_vm1, %v2354_v2  ;;  %1996 = vmatpush3.msra.mxu1 %v490_v22 }
 0x662   : > { %2011 = vmatprep.subr.mxu1 %v2354_v2 }
 0x663   : > { %s1879_s18 = sshll.u32 %s2867_s29, 7 }
 0x664   : > { %s1684_s5 = scalar_lea.hbm %s2869_s6, %s1879_s18 }
 0x71c   : > { %v1128_v9 = vpop.f32.mrf.mxu1 }
 0x71d   : > { %1983 = vmatmul.mubr.msk.f32.vlgmr.msra.gmra.mxu0 %vm494_vm3, %v1128_v9 }
 0x71e   : > { %v1979_v11 = vpop.f32.mrf.mxu1  ;;  %1992 = vmatprep.mubr.msk.f32.mxu0 %vm2355_vm1, %v2354_v2 }
 0x720   : > { %v1280_v12 = vpop.f32.mrf.mxu1 }
 0x721   : > { %v1284_v14 = vsel %vm494_vm3, %v1280_v12, -inf }
 0x722   : > { %1285 = vmax.xlane.f32.xlu0 %v1284_v14  ;;  %v1989_v15 = vpop.f32.mrf.mxu1  ;;  %v1569_v14 = vsub.s32 3, %v2633_v8 }
 0x724   : > { %v1570_v15 = vrot.slane %v2638_v10, %v1569_v14 }
 0x738   : > { %1295 = vrot.lane.b32.xlu0 %v2641_v13, %s2366_s10 }
 0x7ab   : > { %v1286_v16 = vpop.xlane.xlu0 %1285 }
 0x7ac   : > { %v1287_v17 = vsub.f32 %v1280_v12, %v1286_v16 }
 0x7ae   : > { %v1288_v18 = vmul.f32 1.442695, %v1287_v17 }
 0x7af   : > { %v1296_v19 = vpop.permute.xlu0 %1295 }
 0x7b0   : > { %2162 = vpow2.f32 %v1288_v18  ;;  %1991 = vmatpush3.msra.mxu0 %v1296_v19 }
 0x7b1   : > { %2000 = vmatprep.subr.mxu0 %v2354_v2 }
 0x7bd   : > { %v2163_v20 = vpop.eup %2162 }
 0x7be   : > { %v1290_v21 = vsel %vm494_vm3, %v2163_v20, 0.0 }
 0x7bf   : > { %1291 = vadd.xlane.f32.xlu1 %v1290_v21 }
 0x7dd   : > { %v1201_v23 = vpop.f32.mrf.mxu0 }
 0x7de   : > { %v1205_v24 = vadd.f32 %v1201_v23, %v964_v53 }
 0x7df   : > { %v1984_v25 = vpop.f32.mrf.mxu0 }
 0x848   : > { %v1292_v13 = vpop.xlane.xlu1 %1291 }
 0x849   : > { %2164 = vrcp.f32 %v1292_v13 }
 0x856   : > { %v2165_v26 = vpop.eup %2164 }
 0x857   : > { %v1294_v27 = vmul.f32 %v2165_v26, %v2163_v20 }
 0x859   : > { %1993 = vmatmul.mubr.msk.f32.vlgmr.msra.gmra.mxu0 %vm494_vm3, %v1294_v27 }
 0x85a   : > { %2008 = vmatprep.mubr.msk.f32.mxu0 %vm2355_vm1, %v2354_v2  ;;  %2001 = vmatpush3.msra.mxu0 %v1480_v40 }
 0x85b   : > { %2002 = vmatprep.subr.mxu0 %v2354_v2 }
 0x85c   : > { %2003 = vmatpush3.msra.mxu0 %v1479_v41 }
 0x85d   : > { %2004 = vmatprep.subr.mxu0 %v2354_v2 }
 0x85e   : > { %2005 = vmatpush3.msra.mxu0 %v1478_v42 }
 0x85f   : > { %2006 = vmatprep.subr.mxu0 %v2354_v2 }
 0x919   : > { %v1367_v28 = vpop.f32.mrf.mxu0 }
 0x91a   : > { %1998 = vmatmul.mubr.msk.f32.vlgmr.msra.gmra.mxu1 %vm494_vm3, %v1367_v28  ;;  %v1663_v28 = vsub.s32 6, %v2633_v8 }
 0x91b   : > { %v1994_v29 = vpop.f32.mrf.mxu0  ;;  %2027 = vmatprep.mubr.msk.f32.mxu1 %vm2355_vm1, %v2354_v2  ;;  %2012 = vmatpush3.msra.mxu1 %v1566_v43 }
 0x91c   : > { %2013 = vmatprep.subr.mxu1 %v2354_v2  ;;  %v1668_v29 = vsub.s32 7, %v2633_v8 }
 0x91d   : > { %2014 = vmatpush3.msra.mxu1 %v1565_v44 }
 0x91e   : > { %2015 = vmatprep.subr.mxu1 %v2354_v2 }
 0x91f   : > { %2016 = vmatpush3.msra.mxu1 %v1564_v45 }
 0x920   : > { %2017 = vmatprep.subr.mxu1 %v2354_v2 }
 0x921   : > { %2018 = vmatpush3.msra.mxu1 %v1563_v46 }
 0x922   : > { %2019 = vmatprep.subr.mxu1 %v2354_v2 }
 0x923   : > { %2020 = vmatpush3.msra.mxu1 %v1562_v47 }
 0x924   : > { %2021 = vmatprep.subr.mxu1 %v2354_v2 }
 0x925   : > { %2022 = vmatpush3.msra.mxu1 %v1561_v0 }
 0x926   : > { %2023 = vmatprep.subr.mxu1 %v2354_v2 }
 0x927   : > { %2024 = vmatpush3.msra.mxu1 %v1560_v1 }
 0x928   : > { %2025 = vmatprep.subr.mxu1 %v2354_v2 }
 0x929   : > { %2026 = vmatpush3.msra.mxu1 %v1559_v3 }
 0x9da   : > { %v1440_v32 = vpop.f32.mrf.mxu1 }
 0x9db   : > { %v1444_v33 = vadd.f32 %v1440_v32, %v1205_v24 }
 0x9dc   : > { %v1999_v34 = vpop.f32.mrf.mxu1 }
 0x9dd   : > { %v1449_v35 = vadd.f32 %v1448_v31, %v1444_v33  ;;  %v1664_v31 = vrot.slane %v2638_v10, %v1663_v28  ;;  %v1669_v34 = vrot.slane %v2638_v10, %v1668_v29 }
 0x9df   : > { %v1450_v36 = vadd.f32 %v1449_v35, %v2625_v6  ;;  %v1477_v6 = vld [vmem:[%s2605_s16] sm:$0xff] }
 0x9e0   : > { %2007 = vmatpush3.msra.mxu0 %v1477_v6 }
 0x9e1   : > { %v1451_v37 = vsel %vm413_vm2, %v1450_v36, 0.0  ;;  %v1456_v38 = vmul.f32 %v1450_v36, %v1450_v36 }
 0x9e2   : > { %1452 = vadd.xlane.f32.xlu1 %v1451_v37 }
 0x9e3   : > { %v1457_v39 = vsel %vm413_vm2, %v1456_v38, 0.0 }
 0x9e6   : > { %1458 = vadd.xlane.f32.xlu1 %v1457_v39 }
 0xa6b   : > { %v1453_v48 = vpop.xlane.xlu1 %1452 }
 0xa6c   : > { %v1455_v49 = vmul.f32 0.03125, %v1453_v48 }
 0xa6e   : > { %v1461_v51 = vmul.f32 %v1455_v49, %v1455_v49  ;;  %v1463_v57 = vsub.f32 %v1450_v36, %v1455_v49 }
 0xa6f   : > { %v1459_v50 = vpop.xlane.xlu1 %1458 }
 0xa70   : > { %v1460_v52 = vmul.f32 0.03125, %v1459_v50 }
 0xa72   : > { %v1462_v53 = vsub.f32 %v1460_v52, %v1461_v51 }
 0xa74   : > { %v1464_v54 = vadd.f32 1e-05, %v1462_v53 }
 0xa76   : > { %2166 = vrsqrt.f32 %v1464_v54 }
 0xa83   : > { %v2167_v59 = vpop.eup %2166 }
 0xa84   : > { %v1466_v60 = vmul.f32 %v2167_v59, %v1463_v57 }
 0xa86   : > { %v1471_v62 = vmul.f32 %v1470_v58, %v1466_v60 }
 0xa88   : > { %v1476_v63 = vadd.f32 %v1475_v61, %v1471_v62 }
 0xa8a   : > { %2009 = vmatmul.mubr.msk.f32.vlgmr.msra.gmra.mxu0 %vm413_vm2, %v1476_v63 }
 0xb4a   : > { %v1554_v7 = vpop.f32.mrf.mxu0 }
 0xb4b   : > { %v1555_v9 = vadd.f32 %v1554_v7, %v1484_v5 }
 0xb4c   : > { %v2010_v11 = vpop.f32.mrf.mxu0 }
 0xb4d   : > { %v1558_v12 = vmax.f32 %v1555_v9, 0.0 }
 0xb4f   : > { %2028 = vmatmul.mubr.msk.f32.vlgmr.msra.gmra.mxu1 %vm1571_vm4, %v1558_v12 }
 0xc0f   : > { %v1641_v16 = vpop.f32.mrf.mxu1 }
 0xc10   : > { %v1642_v17 = vadd.f32 %v1641_v16, %v1570_v15 }
 0xc11   : > { %v2029_v18 = vpop.f32.mrf.mxu1 }
 0xc12   : > { %v1645_v19 = vadd.f32 %v1642_v17, %v1476_v63 }
 0xc14   : > { %v1646_v2 = vsel %vm413_vm2, %v1645_v19, 0.0  ;;  %v1650_v20 = vmul.f32 %v1645_v19, %v1645_v19 }
 0xc15   : > { %1647 = vadd.xlane.f32.xlu1 %v1646_v2 }
 0xc16   : > { %v1651_v21 = vsel %vm413_vm2, %v1650_v20, 0.0 }
 0xc19   : > { %1652 = vadd.xlane.f32.xlu1 %v1651_v21 }
 0xc9e   : > { %v1648_v22 = vpop.xlane.xlu1 %1647 }
 0xc9f   : > { %v1649_v23 = vmul.f32 0.03125, %v1648_v22 }
 0xca1   : > { %v1655_v25 = vmul.f32 %v1649_v23, %v1649_v23  ;;  %v1657_v30 = vsub.f32 %v1645_v19, %v1649_v23 }
 0xca2   : > { %v1653_v24 = vpop.xlane.xlu1 %1652 }
 0xca3   : > { %v1654_v13 = vmul.f32 0.03125, %v1653_v24 }
 0xca5   : > { %v1656_v26 = vsub.f32 %v1654_v13, %v1655_v25 }
 0xca7   : > { %v1658_v27 = vadd.f32 1e-05, %v1656_v26 }
 0xca9   : > { %2168 = vrsqrt.f32 %v1658_v27 }
 0xcb6   : > { %v2169_v32 = vpop.eup %2168 }
 0xcb7   : > { %v1660_v33 = vmul.f32 %v2169_v32, %v1657_v30 }
 0xcb9   : > { %v1665_v35 = vmul.f32 %v1664_v31, %v1660_v33 }
 0xcbb   : > { %v1670_v36 = vadd.f32 %v1669_v34, %v1665_v35 }
 0xcbd   : > { %1671 = vst.msk [vmem:[%s2612_s12] sm:$0xff] %vm413_vm2, %v1670_v36 }
 0xcbe   : > { %2239 = shalt.err (!%p2236_p0)
}
 0xcbf   : > { %s2240_s28 = scalar_lea.hbm %s1684_s5, 128  ;;  %s2244_s24 = scalar_lea.hbm %s2869_s6, 256 }
 0xcc0   : > { %p2241_p11 = scmp.ne.s32.totalorder %s1684_s5, %s2240_s28  ;;  %p2245_p7 = scmp.lt.s32.totalorder %s1684_s5, %s2869_s6 }
 0xcc1   : > { %p2246_p8 = scmp.lt.s32.totalorder %s2244_s24, %s2240_s28 }
 0xcc2   : > { %p2242_p13 = pnand %p2241_p11, %p2870_p12 }
 0xcc3   : > { %p2247_p6 = por %p2246_p8, %p2245_p7 }
 0xcc4   : > { %p2243_p2 = pneg %p2242_p13 }
 0xcc6   : > { %p2248_p1 = pnand %p2247_p6, %p2243_p2 }
 0xcc8   : > { %2251 = shalt.err (!%p2248_p1)
}
 0xcc9   : > { %2034 = dma.vmem_to_hbm [thread:$0]  (%p2870_p12), %s1687_s21, 128, %s1684_s5, %s1673_s27  }
 0xcca PF: > { %s2871_s9 = sld [smem:[#allocation11_spill]]  ;;  %p2048_p5 = scmp.ge.s32.totalorder %s2350_s7, 2 }
 0xccb   : > { %s2872_s10 = sld [smem:[#allocation16_spill]] }
 0xcd0   : > { %s1698_s29 = sand.u32 1, %s2871_s9  }
 0xcd1   : > { %p2873_p3 = scmp.ne.s32.totalorder %s2872_s10, 0  ;;  %s1699_s18 = scalar_lea.sflag [#allocation4], %s1698_s29 }
 0xcd3   : > { %p2044_p4 = pnand %p2048_p5, %p2873_p3 }
 0xcd5   : > { %p2045_p9 = pneg %p2044_p4 }
 0xcd7   : > { %2305 = dma.done.wait (%p2045_p9), %s1699_s18, 128  }
 0xcd8   : > { %2307 = vsyncadd (%p2045_p9), %s1699_s18, 4294967168  ;;  %s25_s7 = sadd.s32 1, %s2350_s7   ;;  %s2874_s27 = sld [smem:[#allocation13_spill]] }
 0xcd9   : > { %p22_p10 = scmp.ge.s32.totalorder %s25_s7, 6   ;;  %s2875_s28 = sld [smem:[#allocation14_spill]] }
 0xcda   : > { %s2876_s29 = sld [smem:[#allocation17_spill]]  ;;  %s2878_s21 = smov %s2314_s22 }
 0xcdb   : > { %s2877_s30 = sld [smem:[#allocation18_spill]]  ;;  %s2879_s22 = smov %s2318_s23 }
 0xcdc   : > { %s2880_s23 = smov %s2548_s8  ;;  %s2881_s24 = smov %s2326_s25 }
 0xcdd   : > { %s2882_s25 = smov %s2330_s26  ;;  %s2883_s26 = smov %s2556_s0 }
 0xcde   :  { %24 = sbr.rel (!%p22_p10) target bundleno = 16 (0x10), region = 118 }
 0xce3   :  { %1704 = vsyncpa [#allocation3], 1 }
 0xce4   :  { %1706 = vsyncpa [#allocation3 + $0x1], 1 }
 0xce5   :  { %1707 = vsyncpa [#allocation6], 1 }
 0xce6   :  { %1709 = vsyncpa [#allocation6 + $0x1], 1 }
 0xce7   :  { %1710 = vsyncpa [#allocation4], 1 }
 0xce8   :  { %1712 = vsyncpa [#allocation4 + $0x1], 1 }

</bundles_post_ra>
